<compile_context>
chip_gen: v7x
topology: tpu7x:2x2x1
jax: 0.10.0
libtpu: 0.0.40
codegen_flags: <defaults>
</compile_context>

<pallas_src>
import math

import jax
import jax.numpy as jnp
from jax.experimental import pallas as pl
from jax.experimental.pallas import tpu as pltpu

# ---------------- constants (match the PyTorch module defaults) ----------------
ALPHA = 0.25            # focal alpha
GAMMA = 2.0             # focal gamma (== 2 -> implemented as a square, no EUP pow)
IOU_THRES = 0.5
SL1_BETA = 1.0 / 9.0    # lmr5p smooth-L1 beta
SL1_HALF_OVER_BETA = 0.5 / SL1_BETA      # precomputed reciprocal (VPU mul only)
SL1_HALF_BETA = 0.5 * SL1_BETA
BL_BETA, BL_ALPHA, BL_GAMMA = 0.5, 0.5, 0.9
BL_B = math.e ** (BL_GAMMA / BL_ALPHA) - 1.0
BL_ALPHA_OVER_B = BL_ALPHA / BL_B        # precomputed constants: no runtime divides
BL_B_OVER_BETA = BL_B / BL_BETA
BL_CONST = BL_GAMMA / BL_B - BL_ALPHA * BL_BETA
HALF_PI = math.pi / 2.0


# ------------------------------ fused Pallas kernel -----------------------------
def _smooth_l1(diff):
    d = jnp.abs(diff)
    return jnp.where(d < SL1_BETA, SL1_HALF_OVER_BETA * d * d, d - SL1_HALF_BETA)


def _balanced_l1(d):
    # d >= 0
    return jnp.where(
        d < BL_BETA,
        BL_ALPHA_OVER_B * (BL_B * d + 1.0) * jnp.log(d * BL_B_OVER_BETA + 1.0)
        - BL_ALPHA * d,
        BL_GAMMA * d + BL_CONST,
    )


def _multi_loss_kernel(cls_ref, ctg_ref, reg_ref, anc_ref, ann_ref,
                       lmk_ref, lann_ref, msk_ref, out_ref):
    # cls_ref/ctg_ref : (Bt, C, A)   predictions / focal targets
    # reg_ref         : (Bt, 5, A)   box regression predictions
    # anc_ref         : (Bt, 5, A)   anchors (cx, cy, w, h, theta)
    # ann_ref         : (Bt, 5, A)   assigned gt boxes (cx, cy, w, h, theta)
    # lmk_ref/lann_ref: (Bt, L, A)   landmark preds / assigned gt landmarks
    #                                (de-interleaved: rows [0:L/2]=x, [L/2:L]=y)
    # msk_ref         : (Bt, 1, A)   positive-anchor mask
    # out_ref         : (Bt, 3*A)    lane-dense per-anchor partial sums
    A = out_ref.shape[1] // 3

    # ---- focal classification loss -------------------------------------------
    c = jnp.clip(cls_ref[...], 1e-4, 1.0 - 1e-4)
    t = ctg_ref[...]
    is_pos = t == 1.0
    alpha_f = jnp.where(is_pos, ALPHA, 1.0 - ALPHA)
    fw = jnp.where(is_pos, 1.0 - c, c)
    fw = alpha_f * (fw * fw)                                  # gamma == 2 -> square
    # single-log BCE: for unmasked targets t in {0, 1}
    bce = -jnp.log(jnp.where(is_pos, c, 1.0 - c) + 1e-6)
    cls_loss = jnp.where(t != -1.0, fw * bce, 0.0)
    cls_part = jnp.sum(cls_loss, axis=1)                      # (Bt, A)

    # ---- shared anchor decomposition (sublane rows) ---------------------------
    anc = anc_ref[...]
    ax = anc[:, 0, :]
    ay = anc[:, 1, :]
    inv_aw = 1.0 / anc[:, 2, :]
    inv_ah = 1.0 / anc[:, 3, :]
    at = anc[:, 4, :]
    m = msk_ref[...][:, 0, :] > 0.0                           # (Bt, A)

    # ---- lmr5p box regression loss (box_coder.encode fused in-kernel) ---------
    # TODO(synk): original BoxCoder implementation was not provided with the module;
    # a deterministic rotated-box delta coder (dx,dy,dw,dh,dtheta) is synthesized here.
    ann = ann_ref[...]
    x1 = (ann[:, 0, :] - ax) * inv_aw
    y1 = (ann[:, 1, :] - ay) * inv_ah
    w1 = jnp.log(jnp.maximum(ann[:, 2, :], 1e-6) * inv_aw)
    h1 = jnp.log(jnp.maximum(ann[:, 3, :], 1e-6) * inv_ah)
    th1 = ann[:, 4, :] - at

    reg = reg_ref[...]
    x2 = reg[:, 0, :]
    y2 = reg[:, 1, :]
    w2 = reg[:, 2, :]
    h2 = reg[:, 3, :]
    th2 = reg[:, 4, :]
    th22 = jnp.where(th2 > 0.0, th2 - HALF_PI, th2 + HALF_PI)  # lmr5pangle

    l12 = _smooth_l1(x1 - x2) + _smooth_l1(y1 - y2)
    la = l12 + _smooth_l1(w1 - w2) + _smooth_l1(h1 - h2) + _smooth_l1(th1 - th2)
    lb = l12 + _smooth_l1(w1 - h2) + _smooth_l1(h1 - w2) + _smooth_l1(th1 - th22)
    reg1_part = jnp.where(m, jnp.minimum(la, lb), 0.0)         # (Bt, A)

    # ---- balanced-L1 landmark loss (landmarkencode fused in-kernel) -----------
    L2 = lmk_ref.shape[1] // 2
    lmk = lmk_ref[...]
    lann = lann_ref[...]
    tx = (lann[:, :L2, :] - ax[:, None, :]) * inv_aw[:, None, :]
    ty = (lann[:, L2:, :] - ay[:, None, :]) * inv_ah[:, None, :]
    dx = jnp.abs(lmk[:, :L2, :] - tx)
    dy = jnp.abs(lmk[:, L2:, :] - ty)
    bl = jnp.sum(_balanced_l1(dx), axis=1) + jnp.sum(_balanced_l1(dy), axis=1)
    reg2_part = jnp.where(m, bl, 0.0)                          # (Bt, A)

    # lane-dense stores at 128-aligned lane offsets (no cross-lane reduce in kernel)
    out_ref[:, 0 * A:1 * A] = cls_part
    out_ref[:, 1 * A:2 * A] = reg1_part
    out_ref[:, 2 * A:3 * A] = reg2_part


def _fused_loss_sums(cls_p, cls_t, reg_p, anc, ann, lmk_p, lmk_t, msk):
    """One fused pallas_call; returns per-image (cls_sum, reg1_sum, reg2_sum), each (B,)."""
    B, _, A = cls_p.shape
    Bt = B if B <= 8 else 8
    Bpad = ((B + Bt - 1) // Bt) * Bt
    inputs = [cls_p, cls_t, reg_p, anc, ann, lmk_p, lmk_t, msk]
    if Bpad != B:
        inputs = [jnp.pad(x, ((0, Bpad - B), (0, 0), (0, 0))) for x in inputs]

    in_specs = [
        pl.BlockSpec((Bt,) + x.shape[1:], lambda b: (b, 0, 0)) for x in inputs
    ]
    out = pl.pallas_call(
        _multi_loss_kernel,
        out_shape=jax.ShapeDtypeStruct((Bpad, 3 * A), jnp.float32),
        grid=(Bpad // Bt,),
        in_specs=in_specs,
        out_specs=pl.BlockSpec((Bt, 3 * A), lambda b: (b, 0)),
        compiler_params=pltpu.CompilerParams(dimension_semantics=("parallel",)),
    )(*inputs)
    sums = out[:B].reshape(B, 3, A).sum(axis=-1)   # finish the 128-lane reduce in XLA
    return sums[:, 0], sums[:, 1], sums[:, 2]


# ----------------------------- target assignment (glue) -------------------------
def _aabb_iou(anchors, gts):
    """Axis-aligned IoU on (cx, cy, w, h), rotation ignored."""
    # TODO(synk): rbox_overlaps / min_area_square (rotated polygon IoU computed on CPU
    # with numpy/C extensions) have no Pallas equivalent; axis-aligned IoU is used.
    ax1 = anchors[:, 0] - anchors[:, 2] / 2
    ay1 = anchors[:, 1] - anchors[:, 3] / 2
    ax2 = anchors[:, 0] + anchors[:, 2] / 2
    ay2 = anchors[:, 1] + anchors[:, 3] / 2
    gx1 = gts[:, 0] - gts[:, 2] / 2
    gy1 = gts[:, 1] - gts[:, 3] / 2
    gx2 = gts[:, 0] + gts[:, 2] / 2
    gy2 = gts[:, 1] + gts[:, 3] / 2
    iw = jnp.clip(jnp.minimum(ax2[:, None], gx2[None, :])
                  - jnp.maximum(ax1[:, None], gx1[None, :]), 0.0)
    ih = jnp.clip(jnp.minimum(ay2[:, None], gy2[None, :])
                  - jnp.maximum(ay1[:, None], gy1[None, :]), 0.0)
    inter = iw * ih
    area_a = anchors[:, 2] * anchors[:, 3]
    area_g = gts[:, 2] * gts[:, 3]
    union = area_a[:, None] + area_g[None, :] - inter
    return inter / jnp.maximum(union, 1e-8)


def _assign_one(anchors_j, ann_j, lmk_ann_j, num_classes):
    A = anchors_j.shape[0]
    C = num_classes
    valid = ann_j[:, 5] != -1.0                             # (M,)
    num_valid = valid.sum()

    ious = _aabb_iou(anchors_j, ann_j[:, :5])               # (A, M)
    ious = jnp.where(valid[None, :], ious, -1.0)

    iou_max = ious.max(axis=1)
    iou_argmax = ious.argmax(axis=1)
    positive = iou_max >= IOU_THRES

    max_gt = ious.max(axis=0)
    argmax_gt = ious.argmax(axis=0)
    force = valid & (max_gt < IOU_THRES)
    force_vec = jnp.zeros((A,), jnp.int32).at[argmax_gt].max(force.astype(jnp.int32))
    positive = positive | (force_vec > 0)
    num_pos = positive.sum()

    cls_t = jnp.full((A, C), -1.0, jnp.float32)
    cls_t = jnp.where((iou_max < IOU_THRES - 0.1)[:, None], 0.0, cls_t)
    cls_t = jnp.where(positive[:, None], 0.0, cls_t)
    assigned_ann = ann_j[iou_argmax]                        # (A, 6)
    assigned_lmk = lmk_ann_j[iou_argmax]                    # (A, L)
    onehot = jax.nn.one_hot(assigned_ann[:, 5].astype(jnp.int32), C, dtype=jnp.float32)
    cls_t = jnp.where(positive[:, None] & (onehot > 0.0), 1.0, cls_t)

    pos_mask = positive.astype(jnp.float32)                 # (A,)
    return cls_t, assigned_ann[:, :5], assigned_lmk, pos_mask, num_pos, num_valid


# --------------------------------- MultiLoss ------------------------------------
def multi_loss(classifications, regressions, anchors, annotations,
               landmarks, gt_linestrips, num_classes):
    cls_t, ass_ann, ass_lmk, pos_mask, num_pos, num_valid = jax.vmap(
        lambda a, b, c: _assign_one(a, b, c, num_classes)
    )(anchors, annotations, gt_linestrips)

    L = landmarks.shape[-1]

    # layout plumbing: anchor axis -> lanes (B, A, D) -> (B, D, A);
    # landmarks are de-interleaved so x coords are rows [0:L/2] and y coords [L/2:L].
    def T(x):
        return jnp.swapaxes(x, 1, 2)

    def deinterleave(x):
        return jnp.concatenate([T(x[..., 0::2]), T(x[..., 1::2])], axis=1)

    cls_sum, reg1_sum, reg2_sum = _fused_loss_sums(
        T(classifications), T(cls_t), T(regressions), T(anchors), T(ass_ann),
        deinterleave(landmarks), deinterleave(ass_lmk), pos_mask[:, None, :],
    )

    num_pos_f = num_pos.astype(jnp.float32)
    has_gt = num_valid > 0
    has_pos = has_gt & (num_pos > 0)
    denom = jnp.maximum(num_pos_f, 1.0)

    cls_loss = jnp.where(has_gt, cls_sum / denom, 0.0)
    reg1_loss = jnp.where(has_pos, reg1_sum / (5.0 * denom), 0.0)
    reg2_loss = jnp.where(has_pos, reg2_sum / (L * denom), 0.0)

    loss_cls = jnp.mean(cls_loss, axis=0, keepdims=True)
    loss_reg1 = jnp.mean(reg1_loss, axis=0, keepdims=True)
    loss_reg2 = jnp.mean(reg2_loss, axis=0, keepdims=True)
    return loss_cls, loss_reg1, loss_reg2


# ------------------------------------ demo --------------------------------------
if __name__ == "__main__":
    B, A, C, M, L = 2, 128, 8, 4, 4
    key = jax.random.PRNGKey(0)
    k = jax.random.split(key, 8)

    classifications = jax.nn.sigmoid(jax.random.normal(k[0], (B, A, C))).astype(jnp.float32)
    regressions = 0.1 * jax.random.normal(k[1], (B, A, 5)).astype(jnp.float32)
    landmarks = 0.1 * jax.random.normal(k[2], (B, A, L)).astype(jnp.float32)

    # rotated anchors: (cx, cy, w, h, theta) on a coarse grid
    gx = jnp.tile(jnp.arange(16, dtype=jnp.float32) * 8.0 + 4.0, 8)
    gy = jnp.repeat(jnp.arange(8, dtype=jnp.float32) * 16.0 + 8.0, 16)
    aw = jnp.full((A,), 12.0)
    ah = jnp.full((A,), 20.0)
    ath = jnp.zeros((A,))
    anchors = jnp.broadcast_to(
        jnp.stack([gx, gy, aw, ah, ath], axis=-1), (B, A, 5)).astype(jnp.float32)

    # annotations: (cx, cy, w, h, theta, label); last row per image is padding (label=-1)
    acx = 20.0 + 80.0 * jax.random.uniform(k[3], (B, M))
    acy = 20.0 + 80.0 * jax.random.uniform(k[4], (B, M))
    awd = 10.0 + 15.0 * jax.random.uniform(k[5], (B, M))
    aht = 15.0 + 15.0 * jax.random.uniform(k[6], (B, M))
    athg = 0.5 * (jax.random.uniform(k[7], (B, M)) - 0.5)
    labels = jnp.tile(jnp.arange(M, dtype=jnp.float32) % C, (B, 1))
    annotations = jnp.stack([acx, acy, awd, aht, athg, labels], axis=-1)
    annotations = annotations.at[:, -1, :].set(
        jnp.array([0.0, 0.0, 1.0, 1.0, 0.0, -1.0]))
    annotations = annotations.astype(jnp.float32)

    gt_linestrips = jnp.stack(
        [acx - awd / 4, acy - aht / 4, acx + awd / 4, acy + aht / 4], axis=-1
    ).astype(jnp.float32)

    fn = jax.jit(lambda c, r, a, ann, lm, ls: multi_loss(c, r, a, ann, lm, ls, C))
    loss_cls, loss_reg1, loss_reg2 = fn(
        classifications, regressions, anchors, annotations, landmarks, gt_linestrips
    )
    jax.block_until_ready((loss_cls, loss_reg1, loss_reg2))
    assert loss_cls.shape == (1,) and loss_reg1.shape == (1,) and loss_reg2.shape == (1,)
    assert all(bool(jnp.isfinite(x).all()) for x in (loss_cls, loss_reg1, loss_reg2))
    print("KERNEL_OK")
</pallas_src>

<mosaic_0001>
module attributes {stable_mosaic.version = 11 : i64} {
  func.func @_multi_loss_kernel(%arg0: i32, %arg1: memref<2x8x128xf32, #tpu.memory_space<vmem>>, %arg2: memref<2x8x128xf32, #tpu.memory_space<vmem>>, %arg3: memref<2x5x128xf32, #tpu.memory_space<vmem>>, %arg4: memref<2x5x128xf32, #tpu.memory_space<vmem>>, %arg5: memref<2x5x128xf32, #tpu.memory_space<vmem>>, %arg6: memref<2x4x128xf32, #tpu.memory_space<vmem>>, %arg7: memref<2x4x128xf32, #tpu.memory_space<vmem>>, %arg8: memref<2x1x128xf32, #tpu.memory_space<vmem>>, %arg9: memref<2x384xf32, #tpu.memory_space<vmem>>) attributes {dimension_semantics = [#tpu.dimension_semantics<parallel>], iteration_bounds = array<i64: 1>, scalar_prefetch = 0 : i64, scratch_operands = 0 : i64, tpu.core_type = #tpu.core_type<tc>, window_params = [{transform_indices = @transform_0, window_bounds = array<i64: 2, 8, 128>}, {transform_indices = @transform_1, window_bounds = array<i64: 2, 8, 128>}, {transform_indices = @transform_2, window_bounds = array<i64: 2, 5, 128>}, {transform_indices = @transform_3, window_bounds = array<i64: 2, 5, 128>}, {transform_indices = @transform_4, window_bounds = array<i64: 2, 5, 128>}, {transform_indices = @transform_5, window_bounds = array<i64: 2, 4, 128>}, {transform_indices = @transform_6, window_bounds = array<i64: 2, 4, 128>}, {transform_indices = @transform_7, window_bounds = array<i64: 2, 1, 128>}, {transform_indices = @transform_8, window_bounds = array<i64: 2, 384>}]} {
    %c0 = arith.constant 0 : index
    %c0_0 = arith.constant 0 : index
    %c0_1 = arith.constant 0 : index
    %0 = vector.load %arg1[%c0, %c0_0, %c0_1] : memref<2x8x128xf32, #tpu.memory_space<vmem>>, vector<2x8x128xf32>
    %cst = arith.constant 9.99999974E-5 : f32
    %cst_2 = arith.constant 0.999899983 : f32
    %1 = vector.broadcast %cst : f32 to vector<2x8x128xf32>
    %2 = arith.maximumf %1, %0 : vector<2x8x128xf32>
    %3 = vector.broadcast %cst_2 : f32 to vector<2x8x128xf32>
    %4 = arith.minimumf %3, %2 : vector<2x8x128xf32>
    %c0_3 = arith.constant 0 : index
    %c0_4 = arith.constant 0 : index
    %c0_5 = arith.constant 0 : index
    %5 = vector.load %arg2[%c0_3, %c0_4, %c0_5] : memref<2x8x128xf32, #tpu.memory_space<vmem>>, vector<2x8x128xf32>
    %cst_6 = arith.constant 1.000000e+00 : f32
    %6 = vector.broadcast %cst_6 : f32 to vector<2x8x128xf32>
    %7 = arith.cmpf oeq, %5, %6 : vector<2x8x128xf32>
    %cst_7 = arith.constant 2.500000e-01 : f32
    %cst_8 = arith.constant 7.500000e-01 : f32
    %8 = vector.broadcast %cst_7 : f32 to vector<2x8x128xf32>
    %9 = vector.broadcast %cst_8 : f32 to vector<2x8x128xf32>
    %10 = arith.select %7, %8, %9 : vector<2x8x128xi1>, vector<2x8x128xf32>
    %cst_9 = arith.constant 1.000000e+00 : f32
    %11 = vector.broadcast %cst_9 : f32 to vector<2x8x128xf32>
    %12 = arith.subf %11, %4 : vector<2x8x128xf32>
    %13 = arith.select %7, %12, %4 : vector<2x8x128xi1>, vector<2x8x128xf32>
    %14 = arith.mulf %13, %13 : vector<2x8x128xf32>
    %15 = arith.mulf %10, %14 : vector<2x8x128xf32>
    %cst_10 = arith.constant 1.000000e+00 : f32
    %16 = vector.broadcast %cst_10 : f32 to vector<2x8x128xf32>
    %17 = arith.subf %16, %4 : vector<2x8x128xf32>
    %18 = arith.select %7, %4, %17 : vector<2x8x128xi1>, vector<2x8x128xf32>
    %cst_11 = arith.constant 9.99999997E-7 : f32
    %19 = vector.broadcast %cst_11 : f32 to vector<2x8x128xf32>
    %20 = arith.addf %18, %19 : vector<2x8x128xf32>
    %21 = math.log %20 : vector<2x8x128xf32>
    %cst_12 = arith.constant 0.000000e+00 : f32
    %22 = vector.broadcast %cst_12 : f32 to vector<2x8x128xf32>
    %23 = arith.subf %22, %21 : vector<2x8x128xf32>
    %cst_13 = arith.constant -1.000000e+00 : f32
    %24 = vector.broadcast %cst_13 : f32 to vector<2x8x128xf32>
    %25 = arith.cmpf one, %5, %24 : vector<2x8x128xf32>
    %26 = arith.mulf %15, %23 : vector<2x8x128xf32>
    %cst_14 = arith.constant 0.000000e+00 : f32
    %27 = vector.broadcast %cst_14 : f32 to vector<2x8x128xf32>
    %28 = arith.select %25, %26, %27 : vector<2x8x128xi1>, vector<2x8x128xf32>
    %cst_15 = arith.constant dense<0.000000e+00> : vector<2x128xf32>
    %29 = vector.multi_reduction <add>, %28, %cst_15 [1] : vector<2x8x128xf32> to vector<2x128xf32>
    %c0_16 = arith.constant 0 : index
    %c0_17 = arith.constant 0 : index
    %c0_18 = arith.constant 0 : index
    %30 = vector.load %arg4[%c0_16, %c0_17, %c0_18] : memref<2x5x128xf32, #tpu.memory_space<vmem>>, vector<2x5x128xf32>
    %31 = vector.extract_strided_slice %30 {offsets = [0, 0, 0], sizes = [2, 1, 128], strides = [1, 1, 1]} : vector<2x5x128xf32> to vector<2x1x128xf32>
    %32 = vector.shape_cast %31 : vector<2x1x128xf32> to vector<2x128xf32>
    %33 = vector.extract_strided_slice %30 {offsets = [0, 1, 0], sizes = [2, 1, 128], strides = [1, 1, 1]} : vector<2x5x128xf32> to vector<2x1x128xf32>
    %34 = vector.shape_cast %33 : vector<2x1x128xf32> to vector<2x128xf32>
    %35 = vector.extract_strided_slice %30 {offsets = [0, 2, 0], sizes = [2, 1, 128], strides = [1, 1, 1]} : vector<2x5x128xf32> to vector<2x1x128xf32>
    %36 = vector.shape_cast %35 : vector<2x1x128xf32> to vector<2x128xf32>
    %cst_19 = arith.constant 1.000000e+00 : f32
    %37 = vector.broadcast %cst_19 : f32 to vector<2x128xf32>
    %38 = arith.divf %37, %36 : vector<2x128xf32>
    %39 = vector.extract_strided_slice %30 {offsets = [0, 3, 0], sizes = [2, 1, 128], strides = [1, 1, 1]} : vector<2x5x128xf32> to vector<2x1x128xf32>
    %40 = vector.shape_cast %39 : vector<2x1x128xf32> to vector<2x128xf32>
    %cst_20 = arith.constant 1.000000e+00 : f32
    %41 = vector.broadcast %cst_20 : f32 to vector<2x128xf32>
    %42 = arith.divf %41, %40 : vector<2x128xf32>
    %43 = vector.extract_strided_slice %30 {offsets = [0, 4, 0], sizes = [2, 1, 128], strides = [1, 1, 1]} : vector<2x5x128xf32> to vector<2x1x128xf32>
    %44 = vector.shape_cast %43 : vector<2x1x128xf32> to vector<2x128xf32>
    %c0_21 = arith.constant 0 : index
    %c0_22 = arith.constant 0 : index
    %c0_23 = arith.constant 0 : index
    %45 = vector.load %arg8[%c0_21, %c0_22, %c0_23] : memref<2x1x128xf32, #tpu.memory_space<vmem>>, vector<2x1x128xf32>
    %46 = vector.shape_cast %45 : vector<2x1x128xf32> to vector<2x128xf32>
    %cst_24 = arith.constant 0.000000e+00 : f32
    %47 = vector.broadcast %cst_24 : f32 to vector<2x128xf32>
    %48 = arith.cmpf ogt, %46, %47 : vector<2x128xf32>
    %c0_25 = arith.constant 0 : index
    %c0_26 = arith.constant 0 : index
    %c0_27 = arith.constant 0 : index
    %49 = vector.load %arg5[%c0_25, %c0_26, %c0_27] : memref<2x5x128xf32, #tpu.memory_space<vmem>>, vector<2x5x128xf32>
    %50 = vector.extract_strided_slice %49 {offsets = [0, 0, 0], sizes = [2, 1, 128], strides = [1, 1, 1]} : vector<2x5x128xf32> to vector<2x1x128xf32>
    %51 = vector.shape_cast %50 : vector<2x1x128xf32> to vector<2x128xf32>
    %52 = arith.subf %51, %32 : vector<2x128xf32>
    %53 = arith.mulf %52, %38 : vector<2x128xf32>
    %54 = vector.extract_strided_slice %49 {offsets = [0, 1, 0], sizes = [2, 1, 128], strides = [1, 1, 1]} : vector<2x5x128xf32> to vector<2x1x128xf32>
    %55 = vector.shape_cast %54 : vector<2x1x128xf32> to vector<2x128xf32>
    %56 = arith.subf %55, %34 : vector<2x128xf32>
    %57 = arith.mulf %56, %42 : vector<2x128xf32>
    %58 = vector.extract_strided_slice %49 {offsets = [0, 2, 0], sizes = [2, 1, 128], strides = [1, 1, 1]} : vector<2x5x128xf32> to vector<2x1x128xf32>
    %59 = vector.shape_cast %58 : vector<2x1x128xf32> to vector<2x128xf32>
    %cst_28 = arith.constant 9.99999997E-7 : f32
    %60 = vector.broadcast %cst_28 : f32 to vector<2x128xf32>
    %61 = arith.maximumf %59, %60 : vector<2x128xf32>
    %62 = arith.mulf %61, %38 : vector<2x128xf32>
    %63 = math.log %62 : vector<2x128xf32>
    %64 = vector.extract_strided_slice %49 {offsets = [0, 3, 0], sizes = [2, 1, 128], strides = [1, 1, 1]} : vector<2x5x128xf32> to vector<2x1x128xf32>
    %65 = vector.shape_cast %64 : vector<2x1x128xf32> to vector<2x128xf32>
    %cst_29 = arith.constant 9.99999997E-7 : f32
    %66 = vector.broadcast %cst_29 : f32 to vector<2x128xf32>
    %67 = arith.maximumf %65, %66 : vector<2x128xf32>
    %68 = arith.mulf %67, %42 : vector<2x128xf32>
    %69 = math.log %68 : vector<2x128xf32>
    %70 = vector.extract_strided_slice %49 {offsets = [0, 4, 0], sizes = [2, 1, 128], strides = [1, 1, 1]} : vector<2x5x128xf32> to vector<2x1x128xf32>
    %71 = vector.shape_cast %70 : vector<2x1x128xf32> to vector<2x128xf32>
    %72 = arith.subf %71, %44 : vector<2x128xf32>
    %c0_30 = arith.constant 0 : index
    %c0_31 = arith.constant 0 : index
    %c0_32 = arith.constant 0 : index
    %73 = vector.load %arg3[%c0_30, %c0_31, %c0_32] : memref<2x5x128xf32, #tpu.memory_space<vmem>>, vector<2x5x128xf32>
    %74 = vector.extract_strided_slice %73 {offsets = [0, 0, 0], sizes = [2, 1, 128], strides = [1, 1, 1]} : vector<2x5x128xf32> to vector<2x1x128xf32>
    %75 = vector.shape_cast %74 : vector<2x1x128xf32> to vector<2x128xf32>
    %76 = vector.extract_strided_slice %73 {offsets = [0, 1, 0], sizes = [2, 1, 128], strides = [1, 1, 1]} : vector<2x5x128xf32> to vector<2x1x128xf32>
    %77 = vector.shape_cast %76 : vector<2x1x128xf32> to vector<2x128xf32>
    %78 = vector.extract_strided_slice %73 {offsets = [0, 2, 0], sizes = [2, 1, 128], strides = [1, 1, 1]} : vector<2x5x128xf32> to vector<2x1x128xf32>
    %79 = vector.shape_cast %78 : vector<2x1x128xf32> to vector<2x128xf32>
    %80 = vector.extract_strided_slice %73 {offsets = [0, 3, 0], sizes = [2, 1, 128], strides = [1, 1, 1]} : vector<2x5x128xf32> to vector<2x1x128xf32>
    %81 = vector.shape_cast %80 : vector<2x1x128xf32> to vector<2x128xf32>
    %82 = vector.extract_strided_slice %73 {offsets = [0, 4, 0], sizes = [2, 1, 128], strides = [1, 1, 1]} : vector<2x5x128xf32> to vector<2x1x128xf32>
    %83 = vector.shape_cast %82 : vector<2x1x128xf32> to vector<2x128xf32>
    %cst_33 = arith.constant 0.000000e+00 : f32
    %84 = vector.broadcast %cst_33 : f32 to vector<2x128xf32>
    %85 = arith.cmpf ogt, %83, %84 : vector<2x128xf32>
    %cst_34 = arith.constant 1.57079637 : f32
    %86 = vector.broadcast %cst_34 : f32 to vector<2x128xf32>
    %87 = arith.subf %83, %86 : vector<2x128xf32>
    %cst_35 = arith.constant 1.57079637 : f32
    %88 = vector.broadcast %cst_35 : f32 to vector<2x128xf32>
    %89 = arith.addf %83, %88 : vector<2x128xf32>
    %90 = arith.select %85, %87, %89 : vector<2x128xi1>, vector<2x128xf32>
    %91 = arith.subf %53, %75 : vector<2x128xf32>
    %92 = math.absf %91 : vector<2x128xf32>
    %cst_36 = arith.constant 0.111111112 : f32
    %93 = vector.broadcast %cst_36 : f32 to vector<2x128xf32>
    %94 = arith.cmpf olt, %92, %93 : vector<2x128xf32>
    %cst_37 = arith.constant 4.500000e+00 : f32
    %95 = vector.broadcast %cst_37 : f32 to vector<2x128xf32>
    %96 = arith.mulf %95, %92 : vector<2x128xf32>
    %97 = arith.mulf %96, %92 : vector<2x128xf32>
    %cst_38 = arith.constant 0.055555556 : f32
    %98 = vector.broadcast %cst_38 : f32 to vector<2x128xf32>
    %99 = arith.subf %92, %98 : vector<2x128xf32>
    %100 = arith.select %94, %97, %99 : vector<2x128xi1>, vector<2x128xf32>
    %101 = arith.subf %57, %77 : vector<2x128xf32>
    %102 = math.absf %101 : vector<2x128xf32>
    %cst_39 = arith.constant 0.111111112 : f32
    %103 = vector.broadcast %cst_39 : f32 to vector<2x128xf32>
    %104 = arith.cmpf olt, %102, %103 : vector<2x128xf32>
    %cst_40 = arith.constant 4.500000e+00 : f32
    %105 = vector.broadcast %cst_40 : f32 to vector<2x128xf32>
    %106 = arith.mulf %105, %102 : vector<2x128xf32>
    %107 = arith.mulf %106, %102 : vector<2x128xf32>
    %cst_41 = arith.constant 0.055555556 : f32
    %108 = vector.broadcast %cst_41 : f32 to vector<2x128xf32>
    %109 = arith.subf %102, %108 : vector<2x128xf32>
    %110 = arith.select %104, %107, %109 : vector<2x128xi1>, vector<2x128xf32>
    %111 = arith.addf %100, %110 : vector<2x128xf32>
    %112 = arith.subf %63, %79 : vector<2x128xf32>
    %113 = math.absf %112 : vector<2x128xf32>
    %cst_42 = arith.constant 0.111111112 : f32
    %114 = vector.broadcast %cst_42 : f32 to vector<2x128xf32>
    %115 = arith.cmpf olt, %113, %114 : vector<2x128xf32>
    %cst_43 = arith.constant 4.500000e+00 : f32
    %116 = vector.broadcast %cst_43 : f32 to vector<2x128xf32>
    %117 = arith.mulf %116, %113 : vector<2x128xf32>
    %118 = arith.mulf %117, %113 : vector<2x128xf32>
    %cst_44 = arith.constant 0.055555556 : f32
    %119 = vector.broadcast %cst_44 : f32 to vector<2x128xf32>
    %120 = arith.subf %113, %119 : vector<2x128xf32>
    %121 = arith.select %115, %118, %120 : vector<2x128xi1>, vector<2x128xf32>
    %122 = arith.addf %111, %121 : vector<2x128xf32>
    %123 = arith.subf %69, %81 : vector<2x128xf32>
    %124 = math.absf %123 : vector<2x128xf32>
    %cst_45 = arith.constant 0.111111112 : f32
    %125 = vector.broadcast %cst_45 : f32 to vector<2x128xf32>
    %126 = arith.cmpf olt, %124, %125 : vector<2x128xf32>
    %cst_46 = arith.constant 4.500000e+00 : f32
    %127 = vector.broadcast %cst_46 : f32 to vector<2x128xf32>
    %128 = arith.mulf %127, %124 : vector<2x128xf32>
    %129 = arith.mulf %128, %124 : vector<2x128xf32>
    %cst_47 = arith.constant 0.055555556 : f32
    %130 = vector.broadcast %cst_47 : f32 to vector<2x128xf32>
    %131 = arith.subf %124, %130 : vector<2x128xf32>
    %132 = arith.select %126, %129, %131 : vector<2x128xi1>, vector<2x128xf32>
    %133 = arith.addf %122, %132 : vector<2x128xf32>
    %134 = arith.subf %72, %83 : vector<2x128xf32>
    %135 = math.absf %134 : vector<2x128xf32>
    %cst_48 = arith.constant 0.111111112 : f32
    %136 = vector.broadcast %cst_48 : f32 to vector<2x128xf32>
    %137 = arith.cmpf olt, %135, %136 : vector<2x128xf32>
    %cst_49 = arith.constant 4.500000e+00 : f32
    %138 = vector.broadcast %cst_49 : f32 to vector<2x128xf32>
    %139 = arith.mulf %138, %135 : vector<2x128xf32>
    %140 = arith.mulf %139, %135 : vector<2x128xf32>
    %cst_50 = arith.constant 0.055555556 : f32
    %141 = vector.broadcast %cst_50 : f32 to vector<2x128xf32>
    %142 = arith.subf %135, %141 : vector<2x128xf32>
    %143 = arith.select %137, %140, %142 : vector<2x128xi1>, vector<2x128xf32>
    %144 = arith.addf %133, %143 : vector<2x128xf32>
    %145 = arith.subf %63, %81 : vector<2x128xf32>
    %146 = math.absf %145 : vector<2x128xf32>
    %cst_51 = arith.constant 0.111111112 : f32
    %147 = vector.broadcast %cst_51 : f32 to vector<2x128xf32>
    %148 = arith.cmpf olt, %146, %147 : vector<2x128xf32>
    %cst_52 = arith.constant 4.500000e+00 : f32
    %149 = vector.broadcast %cst_52 : f32 to vector<2x128xf32>
    %150 = arith.mulf %149, %146 : vector<2x128xf32>
    %151 = arith.mulf %150, %146 : vector<2x128xf32>
    %cst_53 = arith.constant 0.055555556 : f32
    %152 = vector.broadcast %cst_53 : f32 to vector<2x128xf32>
    %153 = arith.subf %146, %152 : vector<2x128xf32>
    %154 = arith.select %148, %151, %153 : vector<2x128xi1>, vector<2x128xf32>
    %155 = arith.addf %111, %154 : vector<2x128xf32>
    %156 = arith.subf %69, %79 : vector<2x128xf32>
    %157 = math.absf %156 : vector<2x128xf32>
    %cst_54 = arith.constant 0.111111112 : f32
    %158 = vector.broadcast %cst_54 : f32 to vector<2x128xf32>
    %159 = arith.cmpf olt, %157, %158 : vector<2x128xf32>
    %cst_55 = arith.constant 4.500000e+00 : f32
    %160 = vector.broadcast %cst_55 : f32 to vector<2x128xf32>
    %161 = arith.mulf %160, %157 : vector<2x128xf32>
    %162 = arith.mulf %161, %157 : vector<2x128xf32>
    %cst_56 = arith.constant 0.055555556 : f32
    %163 = vector.broadcast %cst_56 : f32 to vector<2x128xf32>
    %164 = arith.subf %157, %163 : vector<2x128xf32>
    %165 = arith.select %159, %162, %164 : vector<2x128xi1>, vector<2x128xf32>
    %166 = arith.addf %155, %165 : vector<2x128xf32>
    %167 = arith.subf %72, %90 : vector<2x128xf32>
    %168 = math.absf %167 : vector<2x128xf32>
    %cst_57 = arith.constant 0.111111112 : f32
    %169 = vector.broadcast %cst_57 : f32 to vector<2x128xf32>
    %170 = arith.cmpf olt, %168, %169 : vector<2x128xf32>
    %cst_58 = arith.constant 4.500000e+00 : f32
    %171 = vector.broadcast %cst_58 : f32 to vector<2x128xf32>
    %172 = arith.mulf %171, %168 : vector<2x128xf32>
    %173 = arith.mulf %172, %168 : vector<2x128xf32>
    %cst_59 = arith.constant 0.055555556 : f32
    %174 = vector.broadcast %cst_59 : f32 to vector<2x128xf32>
    %175 = arith.subf %168, %174 : vector<2x128xf32>
    %176 = arith.select %170, %173, %175 : vector<2x128xi1>, vector<2x128xf32>
    %177 = arith.addf %166, %176 : vector<2x128xf32>
    %178 = arith.minimumf %144, %177 : vector<2x128xf32>
    %cst_60 = arith.constant 0.000000e+00 : f32
    %179 = vector.broadcast %cst_60 : f32 to vector<2x128xf32>
    %180 = arith.select %48, %178, %179 : vector<2x128xi1>, vector<2x128xf32>
    %c0_61 = arith.constant 0 : index
    %c0_62 = arith.constant 0 : index
    %c0_63 = arith.constant 0 : index
    %181 = vector.load %arg6[%c0_61, %c0_62, %c0_63] : memref<2x4x128xf32, #tpu.memory_space<vmem>>, vector<2x4x128xf32>
    %c0_64 = arith.constant 0 : index
    %c0_65 = arith.constant 0 : index
    %c0_66 = arith.constant 0 : index
    %182 = vector.load %arg7[%c0_64, %c0_65, %c0_66] : memref<2x4x128xf32, #tpu.memory_space<vmem>>, vector<2x4x128xf32>
    %183 = vector.extract_strided_slice %182 {offsets = [0, 0, 0], sizes = [2, 2, 128], strides = [1, 1, 1]} : vector<2x4x128xf32> to vector<2x2x128xf32>
    %184 = vector.shape_cast %32 : vector<2x128xf32> to vector<2x1x128xf32>
    %185 = vector.broadcast %184 : vector<2x1x128xf32> to vector<2x2x128xf32>
    %186 = arith.subf %183, %185 : vector<2x2x128xf32>
    %187 = vector.shape_cast %38 : vector<2x128xf32> to vector<2x1x128xf32>
    %188 = vector.broadcast %187 : vector<2x1x128xf32> to vector<2x2x128xf32>
    %189 = arith.mulf %186, %188 : vector<2x2x128xf32>
    %190 = vector.extract_strided_slice %182 {offsets = [0, 2, 0], sizes = [2, 2, 128], strides = [1, 1, 1]} : vector<2x4x128xf32> to vector<2x2x128xf32>
    %191 = vector.shape_cast %34 : vector<2x128xf32> to vector<2x1x128xf32>
    %192 = vector.broadcast %191 : vector<2x1x128xf32> to vector<2x2x128xf32>
    %193 = arith.subf %190, %192 : vector<2x2x128xf32>
    %194 = vector.shape_cast %42 : vector<2x128xf32> to vector<2x1x128xf32>
    %195 = vector.broadcast %194 : vector<2x1x128xf32> to vector<2x2x128xf32>
    %196 = arith.mulf %193, %195 : vector<2x2x128xf32>
    %197 = vector.extract_strided_slice %181 {offsets = [0, 0, 0], sizes = [2, 2, 128], strides = [1, 1, 1]} : vector<2x4x128xf32> to vector<2x2x128xf32>
    %198 = arith.subf %197, %189 : vector<2x2x128xf32>
    %199 = math.absf %198 : vector<2x2x128xf32>
    %200 = vector.extract_strided_slice %181 {offsets = [0, 2, 0], sizes = [2, 2, 128], strides = [1, 1, 1]} : vector<2x4x128xf32> to vector<2x2x128xf32>
    %201 = arith.subf %200, %196 : vector<2x2x128xf32>
    %202 = math.absf %201 : vector<2x2x128xf32>
    %cst_67 = arith.constant 5.000000e-01 : f32
    %203 = vector.broadcast %cst_67 : f32 to vector<2x2x128xf32>
    %204 = arith.cmpf olt, %199, %203 : vector<2x2x128xf32>
    %cst_68 = arith.constant 5.04964733 : f32
    %205 = vector.broadcast %cst_68 : f32 to vector<2x2x128xf32>
    %206 = arith.mulf %205, %199 : vector<2x2x128xf32>
    %cst_69 = arith.constant 1.000000e+00 : f32
    %207 = vector.broadcast %cst_69 : f32 to vector<2x2x128xf32>
    %208 = arith.addf %206, %207 : vector<2x2x128xf32>
    %cst_70 = arith.constant 0.0990168154 : f32
    %209 = vector.broadcast %cst_70 : f32 to vector<2x2x128xf32>
    %210 = arith.mulf %209, %208 : vector<2x2x128xf32>
    %cst_71 = arith.constant 10.0992947 : f32
    %211 = vector.broadcast %cst_71 : f32 to vector<2x2x128xf32>
    %212 = arith.mulf %199, %211 : vector<2x2x128xf32>
    %cst_72 = arith.constant 1.000000e+00 : f32
    %213 = vector.broadcast %cst_72 : f32 to vector<2x2x128xf32>
    %214 = arith.addf %212, %213 : vector<2x2x128xf32>
    %215 = math.log %214 : vector<2x2x128xf32>
    %216 = arith.mulf %210, %215 : vector<2x2x128xf32>
    %cst_73 = arith.constant 5.000000e-01 : f32
    %217 = vector.broadcast %cst_73 : f32 to vector<2x2x128xf32>
    %218 = arith.mulf %217, %199 : vector<2x2x128xf32>
    %219 = arith.subf %216, %218 : vector<2x2x128xf32>
    %cst_74 = arith.constant 0.899999976 : f32
    %220 = vector.broadcast %cst_74 : f32 to vector<2x2x128xf32>
    %221 = arith.mulf %220, %199 : vector<2x2x128xf32>
    %cst_75 = arith.constant -0.0717697367 : f32
    %222 = vector.broadcast %cst_75 : f32 to vector<2x2x128xf32>
    %223 = arith.addf %221, %222 : vector<2x2x128xf32>
    %224 = arith.select %204, %219, %223 : vector<2x2x128xi1>, vector<2x2x128xf32>
    %cst_76 = arith.constant dense<0.000000e+00> : vector<2x128xf32>
    %225 = vector.multi_reduction <add>, %224, %cst_76 [1] : vector<2x2x128xf32> to vector<2x128xf32>
    %cst_77 = arith.constant 5.000000e-01 : f32
    %226 = vector.broadcast %cst_77 : f32 to vector<2x2x128xf32>
    %227 = arith.cmpf olt, %202, %226 : vector<2x2x128xf32>
    %cst_78 = arith.constant 5.04964733 : f32
    %228 = vector.broadcast %cst_78 : f32 to vector<2x2x128xf32>
    %229 = arith.mulf %228, %202 : vector<2x2x128xf32>
    %cst_79 = arith.constant 1.000000e+00 : f32
    %230 = vector.broadcast %cst_79 : f32 to vector<2x2x128xf32>
    %231 = arith.addf %229, %230 : vector<2x2x128xf32>
    %cst_80 = arith.constant 0.0990168154 : f32
    %232 = vector.broadcast %cst_80 : f32 to vector<2x2x128xf32>
    %233 = arith.mulf %232, %231 : vector<2x2x128xf32>
    %cst_81 = arith.constant 10.0992947 : f32
    %234 = vector.broadcast %cst_81 : f32 to vector<2x2x128xf32>
    %235 = arith.mulf %202, %234 : vector<2x2x128xf32>
    %cst_82 = arith.constant 1.000000e+00 : f32
    %236 = vector.broadcast %cst_82 : f32 to vector<2x2x128xf32>
    %237 = arith.addf %235, %236 : vector<2x2x128xf32>
    %238 = math.log %237 : vector<2x2x128xf32>
    %239 = arith.mulf %233, %238 : vector<2x2x128xf32>
    %cst_83 = arith.constant 5.000000e-01 : f32
    %240 = vector.broadcast %cst_83 : f32 to vector<2x2x128xf32>
    %241 = arith.mulf %240, %202 : vector<2x2x128xf32>
    %242 = arith.subf %239, %241 : vector<2x2x128xf32>
    %cst_84 = arith.constant 0.899999976 : f32
    %243 = vector.broadcast %cst_84 : f32 to vector<2x2x128xf32>
    %244 = arith.mulf %243, %202 : vector<2x2x128xf32>
    %cst_85 = arith.constant -0.0717697367 : f32
    %245 = vector.broadcast %cst_85 : f32 to vector<2x2x128xf32>
    %246 = arith.addf %244, %245 : vector<2x2x128xf32>
    %247 = arith.select %227, %242, %246 : vector<2x2x128xi1>, vector<2x2x128xf32>
    %cst_86 = arith.constant dense<0.000000e+00> : vector<2x128xf32>
    %248 = vector.multi_reduction <add>, %247, %cst_86 [1] : vector<2x2x128xf32> to vector<2x128xf32>
    %249 = arith.addf %225, %248 : vector<2x128xf32>
    %cst_87 = arith.constant 0.000000e+00 : f32
    %250 = vector.broadcast %cst_87 : f32 to vector<2x128xf32>
    %251 = arith.select %48, %249, %250 : vector<2x128xi1>, vector<2x128xf32>
    %c0_88 = arith.constant 0 : index
    %c0_89 = arith.constant 0 : index
    %252 = vector.load %arg9[%c0_88, %c0_89] : memref<2x384xf32, #tpu.memory_space<vmem>>, vector<2x128xf32>
    tpu.vector_store %arg9[%c0_88, %c0_89], %29 {strides = array<i32>} : memref<2x384xf32, #tpu.memory_space<vmem>>, vector<2x128xf32>,
    %c0_90 = arith.constant 0 : index
    %c128 = arith.constant 128 : index
    %253 = vector.load %arg9[%c0_90, %c128] : memref<2x384xf32, #tpu.memory_space<vmem>>, vector<2x128xf32>
    tpu.vector_store %arg9[%c0_90, %c128], %180 {strides = array<i32>} : memref<2x384xf32, #tpu.memory_space<vmem>>, vector<2x128xf32>,
    %c0_91 = arith.constant 0 : index
    %c256 = arith.constant 256 : index
    %254 = vector.load %arg9[%c0_91, %c256] : memref<2x384xf32, #tpu.memory_space<vmem>>, vector<2x128xf32>
    tpu.vector_store %arg9[%c0_91, %c256], %251 {strides = array<i32>} : memref<2x384xf32, #tpu.memory_space<vmem>>, vector<2x128xf32>,
    return
  }
  func.func @transform_0(%arg0: i32) -> (i32, i32, i32) {
    %c0_i32 = arith.constant 0 : i32
    %c0_i32_0 = arith.constant 0 : i32
    %c0_i32_1 = arith.constant 0 : i32
    return %arg0, %c0_i32, %c0_i32_0 : i32, i32, i32
  }
  func.func @transform_1(%arg0: i32) -> (i32, i32, i32) {
    %c0_i32 = arith.constant 0 : i32
    %c0_i32_0 = arith.constant 0 : i32
    %c0_i32_1 = arith.constant 0 : i32
    return %arg0, %c0_i32, %c0_i32_0 : i32, i32, i32
  }
  func.func @transform_2(%arg0: i32) -> (i32, i32, i32) {
    %c0_i32 = arith.constant 0 : i32
    %c0_i32_0 = arith.constant 0 : i32
    %c0_i32_1 = arith.constant 0 : i32
    return %arg0, %c0_i32, %c0_i32_0 : i32, i32, i32
  }
  func.func @transform_3(%arg0: i32) -> (i32, i32, i32) {
    %c0_i32 = arith.constant 0 : i32
    %c0_i32_0 = arith.constant 0 : i32
    %c0_i32_1 = arith.constant 0 : i32
    return %arg0, %c0_i32, %c0_i32_0 : i32, i32, i32
  }
  func.func @transform_4(%arg0: i32) -> (i32, i32, i32) {
    %c0_i32 = arith.constant 0 : i32
    %c0_i32_0 = arith.constant 0 : i32
    %c0_i32_1 = arith.constant 0 : i32
    return %arg0, %c0_i32, %c0_i32_0 : i32, i32, i32
  }
  func.func @transform_5(%arg0: i32) -> (i32, i32, i32) {
    %c0_i32 = arith.constant 0 : i32
    %c0_i32_0 = arith.constant 0 : i32
    %c0_i32_1 = arith.constant 0 : i32
    return %arg0, %c0_i32, %c0_i32_0 : i32, i32, i32
  }
  func.func @transform_6(%arg0: i32) -> (i32, i32, i32) {
    %c0_i32 = arith.constant 0 : i32
    %c0_i32_0 = arith.constant 0 : i32
    %c0_i32_1 = arith.constant 0 : i32
    return %arg0, %c0_i32, %c0_i32_0 : i32, i32, i32
  }
  func.func @transform_7(%arg0: i32) -> (i32, i32, i32) {
    %c0_i32 = arith.constant 0 : i32
    %c0_i32_0 = arith.constant 0 : i32
    %c0_i32_1 = arith.constant 0 : i32
    return %arg0, %c0_i32, %c0_i32_0 : i32, i32, i32
  }
  func.func @transform_8(%arg0: i32) -> (i32, i32) {
    %c0_i32 = arith.constant 0 : i32
    %c0_i32_0 = arith.constant 0 : i32
    return %arg0, %c0_i32 : i32, i32
  }
}

</mosaic_0001>

<bundles_post_ra>
// kernel: _lambda_.1
= control target key start
LH: loop header
LB: loop body
LE: loop exit
PB: predicated region body
PF: predicated region fallthrough
CT: control target
= control target key end

     0   :  { %v273_v13 = vlaneseq  ;;  %v513_v14 = vmov 1983009808   ;;  %v514_v21 = vmov 0.75   ;;  %s806_s0 = inlined_call_operand.vmem [shape: f32[2,8,128], index: 0, kind: input, shape index: {}]   ;;  %s807_s1 = inlined_call_operand.vmem [shape: f32[2,8,128], index: 1, kind: input, shape index: {}]   ;;  %s808_s3 = inlined_call_operand.vmem [shape: f32[2,5,128], index: 3, kind: input, shape index: {}]   ;;  %s809_s4 = inlined_call_operand.vmem [shape: f32[2,5,128], index: 4, kind: input, shape index: {}]   ;;  %s810_s2 = inlined_call_operand.vmem [shape: f32[2,5,128], index: 2, kind: input, shape index: {}]   ;;  %s811_s6 = inlined_call_operand.vmem [shape: f32[2,4,128], index: 6, kind: input, shape index: {}]   ;;  %s812_s5 = inlined_call_operand.vmem [shape: f32[2,4,128], index: 5, kind: input, shape index: {}]   ;;  %s813_s7 = inlined_call_operand.vmem [shape: f32[2,1,128], index: 7, kind: input, shape index: {}]   ;;  %s814_s8 = inlined_call_operand.vmem [shape: f32[2,384], index: 8, kind: output, shape index: {}]  }
   0x1   :  { %v29_v0 = vld [vmem:[%s806_s0] sm:$0xff]  ;;  %v30_v1 = vld [vmem:[%s806_s0 + $0x8] sm:$0xff]  ;;  %v593_v15 = vunpack.c.l.s4 %v513_v14 }
   0x2   :  { %v31_v2 = vmax.f32 %v29_v0, 0.0001  ;;  %v32_v3 = vmax.f32 %v30_v1, 0.0001  ;;  %v569_v4 = vld [vmem:[%s807_s1] sm:$0xff]  ;;  %v574_v5 = vld [vmem:[%s807_s1 + $0x8] sm:$0xff] }
   0x3   :  { %v579_v6 = vld [vmem:[%s808_s3] sm:$0x1f]  ;;  %vm37_vm0 = vcmp.eq.f32.partialorder %v569_v4, 1.0  ;;  %vm38_vm1 = vcmp.eq.f32.partialorder %v574_v5, 1.0  ;;  %v587_v9 = vld [vmem:[%s808_s3 + $0x8] sm:$0x1f]  ;;  %v420_v42 = vunpack.c.0.s8 %v593_v15 }
   0x4   :  { %v33_v7 = vmin.f32 %v31_v2, 0.9999  ;;  %v34_v8 = vmin.f32 %v32_v3, 0.9999  ;;  %493 = vrcp.f32 %v579_v6  ;;  %v87_v12 = vld [vmem:[%s809_s4] sm:$0x1f] }
   0x5   :  { %495 = vrcp.f32 %v587_v9  ;;  %v88_v20 = vld [vmem:[%s809_s4 + $0x8] sm:$0x1f]  ;;  %v39_v22 = vsel %vm37_vm0, 0.25, %v514_v21  ;;  %v40_v23 = vsel %vm38_vm1, 0.25, %v514_v21  ;;  %v611_v28 = vsub.f32 %v87_v12, %v579_v6  ;;  %v616_v30 = vld [vmem:[%s810_s2] sm:$0x1f] }
   0x6   :  { %v41_v10 = vsub.f32 1.0, %v33_v7  ;;  %v42_v11 = vsub.f32 1.0, %v34_v8  ;;  %v99_v29 = vmax.f32 %v87_v12, 1e-06  ;;  %v619_v31 = vsub.f32 %v88_v20, %v587_v9  ;;  %v624_v33 = vld [vmem:[%s810_s2 + $0x8] sm:$0x1f] }
   0x7   :  { %v100_v32 = vmax.f32 %v88_v20, 1e-06  ;;  %v475_v34 = vadd.f32 -1.5707964, %v616_v30  ;;  %v476_v35 = vadd.f32 -1.5707964, %v624_v33  ;;  %v167_v38 = vsub.f32 %v611_v28, %v616_v30 }
   0x8   :  { %v43_v16 = vsel %vm37_vm0, %v41_v10, %v33_v7  ;;  %v44_v17 = vsel %vm38_vm1, %v42_v11, %v34_v8  ;;  %v49_v18 = vsel %vm37_vm0, %v33_v7, %v41_v10  ;;  %v50_v19 = vsel %vm38_vm1, %v34_v8, %v42_v11 }
   0x9   :  { %v51_v24 = vadd.f32 1e-06, %v49_v18  ;;  %v52_v25 = vadd.f32 1e-06, %v50_v19  ;;  %v45_v26 = vmul.f32 %v43_v16, %v43_v16  ;;  %v46_v27 = vmul.f32 %v44_v17, %v44_v17 }
   0xa   :  { %v113_v36 = vadd.f32 1.5707964, %v616_v30  ;;  %v114_v37 = vadd.f32 1.5707964, %v624_v33  ;;  %vm109_vm2 = vcmp.gt.f32.partialorder %v616_v30, 0.0  ;;  %vm110_vm3 = vcmp.gt.f32.partialorder %v624_v33, 0.0 }
   0xb   :  { %497 = vlog2.f32 %v51_v24  ;;  %v168_v39 = vsub.f32 %v619_v31, %v624_v33  ;;  %v638_v41 = vshrl.u32 %v273_v13, 7  ;;  %v169_v45 = vand.u32 2147483647, %v167_v38 }
   0xc   :  { %499 = vlog2.f32 %v52_v25  ;;  %v47_v48 = vmul.f32 %v45_v26, %v39_v22  ;;  %v48_v49 = vmul.f32 %v46_v27, %v40_v23  ;;  %v115_v50 = vsel %vm109_vm2, %v475_v34, %v113_v36 }
   0xd   :  { %v170_v46 = vand.u32 2147483647, %v168_v39  ;;  %v116_v51 = vsel %vm110_vm3, %v476_v35, %v114_v37  ;;  %vm59_vm4 = vcmp.ne.f32.partialorder %v569_v4, -1.0  ;;  %vm60_vm5 = vcmp.ne.f32.partialorder %v574_v5, -1.0 }
   0xe   :  { %v636_v40 = vpop.eup %493  ;;  %v173_v55 = vmul.f32 4.5, %v169_v45  ;;  %v191_v56 = vrot.slane %v616_v30, 1  ;;  %v192_v57 = vrot.slane %v624_v33, 1  ;;  %v217_v58 = vrot.slane %v616_v30, 7 }
   0xf   :  { %v93_v43 = vrot.slane %v636_v40, 2  ;;  %v101_v44 = vmul.f32 %v636_v40, %v99_v29  ;;  %v643_v47 = vpop.eup %495  ;;  %v174_v61 = vmul.f32 4.5, %v170_v46  ;;  %v218_v62 = vrot.slane %v624_v33, 7 }
  0x10   :  { %v94_v52 = vrot.slane %v643_v47, 2  ;;  %v102_v54 = vmul.f32 %v643_v47, %v100_v32  ;;  %v243_v63 = vsub.f32 %v611_v28, %v115_v50  ;;  %v244_v0 = vsub.f32 %v619_v31, %v116_v51 }
  0x11   :  { %v97_v53 = vmul.f32 %v93_v43, %v611_v28  ;;  %501 = vlog2.f32 %v101_v44  ;;  %v275_v1 = vsub.s32 0, %v638_v41  ;;  %vm171_vm6 = vcmp.lt.f32.partialorder %v169_v45, 0.11111111 }
  0x12   :  { %v98_v59 = vmul.f32 %v94_v52, %v619_v31  ;;  %503 = vlog2.f32 %v102_v54  ;;  %v285_v8 = vsub.s32 2, %v638_v41  ;;  %vm172_vm7 = vcmp.lt.f32.partialorder %v170_v46, 0.11111111 }
  0x13   :  { %v117_v60 = vsub.f32 %v97_v53, %v616_v30  ;;  %v175_v12 = vmul.f32 %v173_v55, %v169_v45  ;;  %v481_v13 = vadd.f32 -0.055555556, %v169_v45  ;;  %v176_v17 = vmul.f32 %v174_v61, %v170_v46 }
  0x14   :  { %v118_v3 = vsub.f32 %v98_v59, %v624_v33  ;;  %v482_v18 = vadd.f32 -0.055555556, %v170_v46  ;;  %v661_v22 = vand.u32 2147483647, %v243_v63  ;;  %v663_v25 = vand.u32 2147483647, %v244_v0 }
  0x15   :  { %v498_v2 = vpop.eup %497  ;;  %v119_v7 = vand.u32 2147483647, %v117_v60  ;;  %v666_v29 = vsel %vm171_vm6, %v175_v12, %v481_v13  ;;  %v669_v35 = vrot.slane %v579_v6, %v275_v1  ;;  %vm437_vm3 = vcmask 1041409  }
  0x16   :  { %v500_v10 = vpop.eup %499  ;;  %v54_v11 = vmul.f32 0.6931472, %v498_v2  ;;  %v120_v16 = vand.u32 2147483647, %v118_v3  ;;  %v674_v39 = vsel %vm172_vm7, %v176_v17, %v482_v18  ;;  %v249_v61 = vmul.f32 4.5, %v661_v22 }
  0x17   :  { %v56_v14 = vmul.f32 0.6931472, %v500_v10  ;;  %v123_v20 = vmul.f32 4.5, %v119_v7  ;;  %v477_v21 = vadd.f32 -0.055555556, %v119_v7  ;;  %v184_v46 = vrot.slane %v674_v39, 4 }
  0x18   :  { %v57_v19 = vsub.f32 0.0, %v54_v11  ;;  %vm121_vm8 = vcmp.lt.f32.partialorder %v119_v7, 0.11111111  ;;  %v124_v24 = vmul.f32 4.5, %v120_v16  ;;  %v478_v28 = vadd.f32 -0.055555556, %v120_v16 }
  0x19   :  { %v58_v23 = vsub.f32 0.0, %v56_v14  ;;  %v125_v27 = vmul.f32 %v123_v20, %v119_v7  ;;  %vm122_vm9 = vcmp.lt.f32.partialorder %v120_v16, 0.11111111  ;;  %v250_v2 = vmul.f32 4.5, %v663_v25 }
  0x1a   :  { %v61_v26 = vmul.f32 %v57_v19, %v47_v48  ;;  %v126_v34 = vmul.f32 %v124_v24, %v120_v16  ;;  %v183_v48 = vrot.slane %v666_v29, 4  ;;  %vm247_vm12 = vcmp.lt.f32.partialorder %v661_v22, 0.11111111  ;;  %v756_v29 = vld [vmem:[%s813_s7 + $0x1] sm:$0x1] }
  0x1b   :  { %v502_v31 = vpop.eup %501  ;;  %v62_v32 = vmul.f32 %v58_v23, %v48_v49  ;;  %v129_v38 = vsel %vm121_vm8, %v125_v27, %v477_v21  ;;  %v680_v49 = vrot.slane %v587_v9, %v275_v1  ;;  %vm248_vm13 = vcmp.lt.f32.partialorder %v663_v25, 0.11111111 }
  0x1c   :  { %v63_v36 = vsel %vm59_vm4, %v61_v26, 0.0  ;;  %v104_v37 = vmul.f32 0.6931472, %v502_v31  ;;  %v504_v43 = vpop.eup %503  ;;  %v130_v52 = vsel %vm122_vm9, %v126_v34, %v478_v28  ;;  %v133_v54 = vrot.slane %v129_v38, 1 }
  0x1d   :  { %v64_v44 = vsel %vm60_vm5, %v62_v32, 0.0  ;;  %v65_v45 = vrot.slane %v63_v36, 4  ;;  %v106_v51 = vmul.f32 0.6931472, %v504_v43  ;;  %v134_v63 = vrot.slane %v130_v52, 1 }
  0x1e   :  { %v71_v50 = vrot.slane %v64_v44, 4  ;;  %v139_v4 = vsub.f32 %v104_v37, %v616_v30  ;;  %v195_v55 = vsub.f32 %v104_v37, %v191_v56  ;;  %v137_v12 = vadd.f32 %v133_v54, %v129_v38 }
  0x1f   :  { %v66_v53 = vadd.f32 %v65_v45, %v63_v36  ;;  %v140_v5 = vsub.f32 %v106_v51, %v624_v33  ;;  %v196_v0 = vsub.f32 %v106_v51, %v192_v57  ;;  %v221_v18 = vsub.f32 %v104_v37, %v217_v58 }
  0x20   :  { %v72_v59 = vadd.f32 %v71_v50, %v64_v44  ;;  %v141_v60 = vand.u32 2147483647, %v139_v4  ;;  %v197_v1 = vand.u32 2147483647, %v195_v55  ;;  %v222_v20 = vsub.f32 %v106_v51, %v218_v62 }
  0x21   :  { %v67_v3 = vrot.slane %v66_v53, 2  ;;  %v142_v10 = vand.u32 2147483647, %v140_v5  ;;  %v198_v13 = vand.u32 2147483647, %v196_v0  ;;  %v138_v34 = vadd.f32 %v134_v63, %v130_v52 }
  0x22   :  { %v73_v7 = vrot.slane %v72_v59, 2  ;;  %v145_v11 = vmul.f32 4.5, %v141_v60  ;;  %vm143_vm10 = vcmp.lt.f32.partialorder %v141_v60, 0.11111111  ;;  %v479_v56 = vadd.f32 -0.055555556, %v141_v60 }
  0x23   :  { %v146_v16 = vmul.f32 4.5, %v142_v10  ;;  %vm144_vm11 = vcmp.lt.f32.partialorder %v142_v10, 0.11111111  ;;  %v480_v19 = vadd.f32 -0.055555556, %v142_v10  ;;  %v201_v57 = vmul.f32 4.5, %v197_v1 }
  0x24   :  { %v74_v14 = vadd.f32 %v73_v7, %v72_v59  ;;  %v147_v17 = vmul.f32 %v145_v11, %v141_v60  ;;  %v694_v21 = vadd.f32 %v67_v3, %v66_v53  ;;  %v202_v26 = vmul.f32 4.5, %v198_v13 }
  0x25   :  { %v148_v23 = vmul.f32 %v146_v16, %v142_v10  ;;  %vm199_vm14 = vcmp.lt.f32.partialorder %v197_v1, 0.11111111  ;;  %vm200_vm15 = vcmp.lt.f32.partialorder %v198_v13, 0.11111111  ;;  %v203_v30 = vmul.f32 %v201_v57, %v197_v1 }
  0x26   :  { %v151_v24 = vsel %vm143_vm10, %v147_v17, %v479_v56  ;;  %v75_v27 = vrot.slane %v74_v14, 1  ;;  %v204_v31 = vmul.f32 %v202_v26, %v198_v13  ;;  %v483_v32 = vadd.f32 -0.055555556, %v197_v1  ;;  %v271_v56 = vld [vmem:[%s811_s6] sm:$0xf] }
  0x27   :  { %v152_v58 = vsel %vm144_vm11, %v148_v23, %v480_v19  ;;  %v155_v28 = vrot.slane %v151_v24, 2  ;;  %v484_v62 = vadd.f32 -0.055555556, %v198_v13  ;;  %v487_v36 = vadd.f32 -0.055555556, %v661_v22 }
  0x28   :  { %v156_v33 = vrot.slane %v152_v58, 2  ;;  %v69_v37 = vrot.slane %v694_v21, 1  ;;  %v207_v38 = vsel %vm199_vm14, %v203_v30, %v483_v32  ;;  %v223_v43 = vand.u32 2147483647, %v221_v18  ;;  %v270_v32 = vld [vmem:[%s812_s5 + $0x4] sm:$0xf] }
  0x29   :  { %v224_v44 = vand.u32 2147483647, %v222_v20  ;;  %v699_v45 = vadd.f32 %v75_v27, %v74_v14  ;;  %v161_v50 = vrot.slane %v151_v24, 3  ;;  %v208_v51 = vsel %vm200_vm15, %v204_v31, %v484_v62  ;;  %v269_v31 = vld [vmem:[%s812_s5] sm:$0xf] }
  0x2a   :  { %v211_v4 = vrot.slane %v207_v38, 2  ;;  %v159_v53 = vadd.f32 %v155_v28, %v137_v12  ;;  %v162_v54 = vrot.slane %v152_v58, 3  ;;  %v227_v55 = vmul.f32 4.5, %v223_v43 }
  0x2b   :  { %v251_v52 = vmul.f32 %v249_v61, %v661_v22  ;;  %v160_v59 = vadd.f32 %v156_v33, %v138_v34  ;;  %v212_v5 = vrot.slane %v208_v51, 2  ;;  %vm225_vm0 = vcmp.lt.f32.partialorder %v223_v43, 0.11111111  ;;  %v272_v61 = vld [vmem:[%s811_s6 + $0x4] sm:$0xf] }
  0x2c   :  { %v228_v60 = vmul.f32 4.5, %v224_v44  ;;  %vm226_vm1 = vcmp.lt.f32.partialorder %v224_v44, 0.11111111  ;;  %v229_v63 = vmul.f32 %v227_v55, %v223_v43  ;;  %v485_v0 = vadd.f32 -0.055555556, %v223_v43 }
  0x2d   :  { %v486_v1 = vadd.f32 -0.055555556, %v224_v44  ;;  %v215_v3 = vadd.f32 %v211_v4, %v137_v12  ;;  %v252_v10 = vmul.f32 %v250_v2, %v663_v25  ;;  %v488_v11 = vadd.f32 -0.055555556, %v663_v25 }
  0x2e   :  { %v230_v7 = vmul.f32 %v228_v60, %v224_v44  ;;  %v233_v13 = vsel %vm225_vm0, %v229_v63, %v485_v0  ;;  %v255_v14 = vsel %vm247_vm12, %v251_v52, %v487_v36  ;;  %v281_v16 = vsub.f32 %v271_v56, %v669_v35 }
  0x2f   :  { %v282_v12 = vsub.f32 %v272_v61, %v680_v49  ;;  %v216_v17 = vadd.f32 %v212_v5, %v138_v34  ;;  %v237_v18 = vrot.slane %v233_v13, 3  ;;  %v256_v19 = vsel %vm248_vm13, %v252_v10, %v488_v11 }
  0x30   :  { %v234_v2 = vsel %vm226_vm1, %v230_v7, %v486_v1  ;;  %v165_v57 = vadd.f32 %v161_v50, %v159_v53  ;;  %v286_v23 = vrot.slane %v636_v40, %v285_v8  ;;  %v290_v22 = vrot.slane %v643_v47, %v285_v8 }
  0x31   :  { %v238_v20 = vrot.slane %v234_v2, 3  ;;  %v166_v24 = vadd.f32 %v162_v54, %v160_v59  ;;  %v259_v35 = vrot.slane %v255_v14, 4  ;;  %v295_v49 = vsub.s32 1, %v638_v41 }
  0x32   :  { %v305_v26 = vsub.s32 3, %v638_v41  ;;  %v241_v27 = vadd.f32 %v237_v18, %v215_v3  ;;  %v260_v30 = vrot.slane %v256_v19, 4  ;;  %v291_v25 = vmul.f32 %v286_v23, %v281_v16 }
  0x33   :  { %v292_v58 = vmul.f32 %v290_v22, %v282_v12  ;;  %v242_v28 = vadd.f32 %v238_v20, %v216_v17  ;;  %v296_v8 = vrot.slane %v579_v6, %v295_v49  ;;  %v300_v34 = vrot.slane %v587_v9, %v295_v49 }
  0x34   :  { %v306_v33 = vrot.slane %v636_v40, %v305_v26  ;;  %v310_v62 = vrot.slane %v643_v47, %v305_v26  ;;  %v313_v36 = vsub.f32 %v269_v31, %v291_v25  ;;  %v423_v43 = vsub.s32 %v420_v42, %v638_v41  ;;  %v748_v40 = vld [vmem:[%s813_s7] sm:$0x1] }
  0x35   :  { %v314_v38 = vsub.f32 %v270_v32, %v292_v58  ;;  %v70_v44 = vadd.f32 %v69_v37, %v694_v21  ;;  %v301_v50 = vsub.f32 %v271_v56, %v296_v8  ;;  %v302_v51 = vsub.f32 %v272_v61, %v300_v34 }
  0x36   :  { %v187_v4 = vadd.f32 %v183_v48, %v165_v57  ;;  %v263_v6 = vadd.f32 %v259_v35, %v241_v27  ;;  %v741_v53 = vand.u32 2147483647, %v313_v36  ;;  %v188_v15 = vadd.f32 %v184_v46, %v166_v24 }
  0x37   :  { %v743_v9 = vand.u32 2147483647, %v314_v38  ;;  %v264_v41 = vadd.f32 %v260_v30, %v242_v28  ;;  %v311_v42 = vmul.f32 %v306_v33, %v301_v50  ;;  %v312_v47 = vmul.f32 %v310_v62, %v302_v51 }
  0x38   :  { %v431_v21 = vrot.slane %v699_v45, %v423_v43  ;;  %v329_v54 = vmul.f32 10.099295, %v741_v53  ;;  %vm85_vm2 = vcmp.gt.f32.partialorder %v748_v40, 0.0  ;;  %v265_v55 = vmin.f32 %v187_v4, %v263_v6 }
  0x39   :  { %v317_v48 = vsub.f32 %v269_v31, %v311_v42  ;;  %v318_v37 = vsub.f32 %v270_v32, %v312_v47  ;;  %v330_v39 = vmul.f32 10.099295, %v743_v9  ;;  %v266_v46 = vmin.f32 %v188_v15, %v264_v41 }
  0x3a   :  { %v331_v59 = vadd.f32 1.0, %v329_v54  ;;  %v424_v45 = vrot.slane %v70_v44, %v423_v43  ;;  %vm86_vm4 = vcmp.gt.f32.partialorder %v756_v29, 0.0  ;;  %v436_v63 = vrot.slane %v431_v21, 7 }
  0x3b   :  { %v761_v52 = vand.u32 2147483647, %v317_v48  ;;  %v764_v5 = vand.u32 2147483647, %v318_v37  ;;  %v332_v60 = vadd.f32 1.0, %v330_v39  ;;  %v267_v0 = vsel %vm85_vm2, %v265_v55, 0.0 }
  0x3c   :  { %505 = vlog2.f32 %v331_v59  ;;  %v323_v1 = vmul.f32 5.0496473, %v741_v53  ;;  %vm439_vm5 = vcmask 1043459   ;;  %v268_v3 = vsel %vm86_vm4, %v266_v46, 0.0 }
  0x3d   :  { %507 = vlog2.f32 %v332_v60  ;;  %v324_v7 = vmul.f32 5.0496473, %v743_v9  ;;  %v372_v10 = vmul.f32 10.099295, %v761_v52  ;;  %v438_v11 = vsel %vm437_vm3, %v436_v63, %v424_v45 }
  0x3e   :  { %v373_v56 = vmul.f32 10.099295, %v764_v5  ;;  %vm441_vm6 = vcmask 1045509   ;;  %vm443_vm7 = vcmask 1047559   ;;  %v325_v13 = vadd.f32 1.0, %v323_v1 }
  0x3f   :  { %v374_v61 = vadd.f32 1.0, %v372_v10  ;;  %v440_v16 = vsel %vm439_vm5, %v436_v63, %v438_v11  ;;  %v449_v12 = vcombine.low %v267_v0, %v268_v3  ;;  %v326_v17 = vadd.f32 1.0, %v324_v7 }
  0x40   :  { %v375_v14 = vadd.f32 1.0, %v373_v56  ;;  %v366_v2 = vmul.f32 5.0496473, %v761_v52  ;;  %v442_v18 = vsel %vm441_vm6, %v436_v63, %v440_v16  ;;  %v367_v19 = vmul.f32 5.0496473, %v764_v5 }
  0x41   :  { %509 = vlog2.f32 %v374_v61  ;;  %489 = vst.sshfl [vmem:[%s814_s8 + $0x2] sm:$0x11 pattern:$0x75316420] %v449_v12  ;;  %v444_v57 = vsel %vm443_vm7, %v436_v63, %v442_v18  ;;  %v327_v20 = vmul.f32 0.099016815, %v325_v13 }
  0x42   :  { %511 = vlog2.f32 %v375_v14  ;;  %v343_v23 = vmul.f32 0.9, %v741_v53  ;;  %446 = vst [vmem:[%s814_s8] sm:$0x3] %v444_v57  ;;  %v328_v24 = vmul.f32 0.099016815, %v326_v17  ;;  %v339_v27 = vmul.f32 0.5, %v741_v53 }
  0x43   :  { %v344_v35 = vmul.f32 0.9, %v743_v9  ;;  %v368_v30 = vadd.f32 1.0, %v366_v2  ;;  %v340_v58 = vmul.f32 0.5, %v743_v9  ;;  %v369_v28 = vadd.f32 1.0, %v367_v19 }
  0x44   :  { %v345_v32 = vadd.f32 -0.07176974, %v343_v23  ;;  %vm321_vm8 = vcmp.lt.f32.partialorder %v741_v53, 0.5  ;;  %vm349_vm9 = vcmask 1041408   ;;  %vm322_vm10 = vcmp.lt.f32.partialorder %v743_v9, 0.5 }
  0x45   :  { %v346_v34 = vadd.f32 -0.07176974, %v344_v35  ;;  %v370_v62 = vmul.f32 0.099016815, %v368_v30  ;;  %v386_v36 = vmul.f32 0.9, %v761_v52 }
  0x46   :  { %v506_v22 = vpop.eup %505  ;;  %v371_v44 = vmul.f32 0.099016815, %v369_v28  ;;  %v387_v50 = vmul.f32 0.9, %v764_v5  ;;  %v382_v15 = vmul.f32 0.5, %v761_v52  ;;  %v383_v9 = vmul.f32 0.5, %v764_v5 }
  0x47   :  { %v508_v49 = vpop.eup %507  ;;  %v334_v26 = vmul.f32 0.6931472, %v506_v22  ;;  %v388_v37 = vadd.f32 -0.07176974, %v386_v36  ;;  %vm364_vm11 = vcmp.lt.f32.partialorder %v761_v52, 0.5  ;;  %vm365_vm12 = vcmp.lt.f32.partialorder %v764_v5, 0.5 }
  0x48   :  { %v336_v25 = vmul.f32 0.6931472, %v508_v49  ;;  %v389_v39 = vadd.f32 -0.07176974, %v387_v50 }
  0x49   :  { %v337_v31 = vmul.f32 %v334_v26, %v327_v20 }
  0x4a   :  { %v338_v8 = vmul.f32 %v336_v25, %v328_v24 }
  0x4b   :  { %v341_v33 = vsub.f32 %v337_v31, %v339_v27  ;;  %v510_v38 = vpop.eup %509 }
  0x4c   :  { %v342_v43 = vsub.f32 %v338_v8, %v340_v58  ;;  %v512_v51 = vpop.eup %511  ;;  %v377_v6 = vmul.f32 0.6931472, %v510_v38 }
  0x4d   :  { %v347_v4 = vsel %vm321_vm8, %v341_v33, %v345_v32  ;;  %v379_v42 = vmul.f32 0.6931472, %v512_v51 }
  0x4e   :  { %v348_v53 = vsel %vm322_vm10, %v342_v43, %v346_v34  ;;  %v350_v41 = vsel %vm349_vm9, %v347_v4, 0.0  ;;  %v380_v48 = vmul.f32 %v377_v6, %v370_v62 }
  0x4f   :  { %v351_v47 = vrot.slane %v350_v41, 4  ;;  %v357_v21 = vsel %vm349_vm9, %v348_v53, 0.0  ;;  %v381_v55 = vmul.f32 %v379_v42, %v371_v44 }
  0x50   :  { %v358_v54 = vrot.slane %v357_v21, 4  ;;  %v384_v59 = vsub.f32 %v380_v48, %v382_v15 }
  0x51   :  { %v352_v46 = vadd.f32 %v351_v47, %v350_v41  ;;  %v385_v60 = vsub.f32 %v381_v55, %v383_v9 }
  0x52   :  { %v359_v45 = vadd.f32 %v358_v54, %v357_v21  ;;  %v390_v0 = vsel %vm364_vm11, %v384_v59, %v388_v37 }
  0x53   :  { %v353_v63 = vrot.slane %v352_v46, 2  ;;  %v391_v3 = vsel %vm365_vm12, %v385_v60, %v389_v39  ;;  %v394_v7 = vrot.slane %v390_v0, 2 }
  0x54   :  { %v360_v1 = vrot.slane %v359_v45, 2  ;;  %v395_v10 = vrot.slane %v391_v3, 2 }
  0x55   :  { %v398_v11 = vsel %vm349_vm9, %v394_v7, 0.0  ;;  %v354_v56 = vadd.f32 %v353_v63, %v352_v46 }
  0x56   :  { %v399_v61 = vrot.slane %v398_v11, 4  ;;  %v405_v52 = vsel %vm349_vm9, %v395_v10, 0.0  ;;  %v361_v13 = vadd.f32 %v360_v1, %v359_v45 }
  0x57   :  { %v406_v14 = vrot.slane %v405_v52, 4  ;;  %v355_v5 = vrot.slane %v354_v56, 1 }
  0x58   :  { %v400_v16 = vadd.f32 %v399_v61, %v398_v11  ;;  %v362_v2 = vrot.slane %v361_v13, 1 }
  0x59   :  { %v407_v12 = vadd.f32 %v406_v14, %v405_v52  ;;  %v356_v20 = vadd.f32 %v355_v5, %v354_v56 }
  0x5a   :  { %v401_v17 = vrot.slane %v400_v16, 2  ;;  %v363_v22 = vadd.f32 %v362_v2, %v361_v13 }
  0x5b   :  { %v408_v18 = vrot.slane %v407_v12, 2 }
  0x5c   :  { %v402_v19 = vadd.f32 %v401_v17, %v400_v16 }
  0x5d   :  { %v409_v57 = vadd.f32 %v408_v18, %v407_v12 }
  0x5e   :  { %v403_v23 = vrot.slane %v402_v19, 1 }
  0x5f   :  { %v410_v24 = vrot.slane %v409_v57, 1 }
  0x60   :  { %v404_v35 = vadd.f32 %v403_v23, %v402_v19 }
  0x61   :  { %v411_v49 = vadd.f32 %v410_v24, %v409_v57 }
  0x62   :  { %v412_v26 = vadd.f32 %v404_v35, %v356_v20 }
  0x63   :  { %v413_v27 = vadd.f32 %v411_v49, %v363_v22 }
  0x64   :  { %v414_v30 = vsel %vm85_vm2, %v412_v26, 0.0 }
  0x65   :  { %v415_v25 = vsel %vm86_vm4, %v413_v27, 0.0 }
  0x66   :  { %v461_v58 = vcombine.low %v414_v30, %v415_v25 }
  0x68   :  { %490 = vst.sshfl [vmem:[%s814_s8 + $0x4] sm:$0x11 pattern:$0x75316420] %v461_v58 }

</bundles_post_ra>
